<compile_context>
chip_gen: v5e
topology: v5e:2x2
jax: 0.10.0
libtpu: 0.0.40
codegen_flags: <defaults>
</compile_context>

<pallas_src>
import functools

import jax
import jax.numpy as jnp
from jax.experimental import pallas as pl
from jax.experimental.pallas import tpu as pltpu


# ---------------------------------------------------------------------------
# Packed-path kernels (several whole blocks per grid step)
# ---------------------------------------------------------------------------

def _packed_bias(x_ref, w_ref, b_ref, o_ref):
    # x: (bt, M, K)  w: (bt, K, N)  b: (bt, 1, N)  o: (bt, M, N)
    acc = jnp.einsum("bmk,bkn->bmn", x_ref[...], w_ref[...],
                     preferred_element_type=jnp.float32)
    o_ref[...] = (acc + b_ref[...].astype(jnp.float32)).astype(o_ref.dtype)


def _packed_nobias(x_ref, w_ref, o_ref):
    acc = jnp.einsum("bmk,bkn->bmn", x_ref[...], w_ref[...],
                     preferred_element_type=jnp.float32)
    o_ref[...] = acc.astype(o_ref.dtype)


def _packed_dense_bias(x_ref, w_ref, b_ref, o_ref):
    # o: (bt, M*N) -- lane-dense store (last dim a multiple of 128)
    acc = jnp.einsum("bmk,bkn->bmn", x_ref[...], w_ref[...],
                     preferred_element_type=jnp.float32)
    acc = acc + b_ref[...].astype(jnp.float32)
    o_ref[...] = acc.reshape(acc.shape[0], -1).astype(o_ref.dtype)


def _packed_dense_nobias(x_ref, w_ref, o_ref):
    acc = jnp.einsum("bmk,bkn->bmn", x_ref[...], w_ref[...],
                     preferred_element_type=jnp.float32)
    o_ref[...] = acc.reshape(acc.shape[0], -1).astype(o_ref.dtype)


# ---------------------------------------------------------------------------
# Tiled-path kernels (M/N tiles; K whole or K-gridded)
# ---------------------------------------------------------------------------

def _fullk_bias(x_ref, w_ref, b_ref, o_ref):
    # single reduction step: no scratch accumulator, direct store
    acc = jnp.dot(x_ref[...], w_ref[...], preferred_element_type=jnp.float32)
    o_ref[...] = (acc + b_ref[...].astype(jnp.float32)).astype(o_ref.dtype)


def _fullk_nobias(x_ref, w_ref, o_ref):
    o_ref[...] = jnp.dot(x_ref[...], w_ref[...],
                         preferred_element_type=jnp.float32).astype(o_ref.dtype)


def _ktiled_bias(x_ref, w_ref, b_ref, o_ref, acc_ref):
    k = pl.program_id(3)

    @pl.when(k == 0)
    def _init():
        acc_ref[...] = jnp.zeros_like(acc_ref)

    acc_ref[...] += jnp.dot(x_ref[...], w_ref[...],
                            preferred_element_type=jnp.float32)

    @pl.when(k == pl.num_programs(3) - 1)
    def _finalize():
        o_ref[...] = (acc_ref[...] + b_ref[...].astype(jnp.float32)).astype(o_ref.dtype)


def _ktiled_nobias(x_ref, w_ref, o_ref, acc_ref):
    k = pl.program_id(3)

    @pl.when(k == 0)
    def _init():
        acc_ref[...] = jnp.zeros_like(acc_ref)

    acc_ref[...] += jnp.dot(x_ref[...], w_ref[...],
                            preferred_element_type=jnp.float32)

    @pl.when(k == pl.num_programs(3) - 1)
    def _finalize():
        o_ref[...] = acc_ref[...].astype(o_ref.dtype)


# ---------------------------------------------------------------------------
# Budget / tile helpers
# ---------------------------------------------------------------------------

@functools.lru_cache(maxsize=1)
def _vmem_limit_bytes():
    """Generation-aware scoped-VMEM limit (~60% of physical per-core VMEM)."""
    cap = None
    try:
        cap = getattr(pltpu.get_tpu_info(), "vmem_capacity_bytes", None)
    except Exception:
        cap = None
    if not cap:
        cap = 64 * 1024 * 1024  # conservative default = v7x per-TensorCore VMEM
    return int(cap * 0.6)        # ~76 MiB on v5e/v6e, ~38 MiB on v7x


def _sublane_align(dtype):
    # f32 -> 8, bf16 -> 16, int8/fp8 -> 32 (sub-32-bit dtypes pack along sublanes)
    return max(8, 32 // jnp.dtype(dtype).itemsize)


def _pick_tile(dim, target, align):
    """Largest t <= min(target, dim) with dim % t == 0 and t % align == 0.
    Returns the full dim when dim <= target or when no aligned divisor exists."""
    if dim <= target:
        return dim
    t = (min(target, dim) // align) * align
    while t >= align:
        if dim % t == 0:
            return t
        t -= align
    return dim


# ---------------------------------------------------------------------------
# pallas_call builders
# ---------------------------------------------------------------------------

def _packed_call(x, weight, bias, out_dtype, bt, lane_dense, vmem_limit, cost):
    B, M, K = x.shape
    N = weight.shape[2]
    grid = (pl.cdiv(B, bt),)   # non-dividing bt ok: last partial block is masked

    in_specs = [pl.BlockSpec((bt, M, K), lambda b: (b, 0, 0)),
                pl.BlockSpec((bt, K, N), lambda b: (b, 0, 0))]
    args = [x, weight]
    if bias is not None:
        in_specs.append(pl.BlockSpec((bt, 1, N), lambda b: (b, 0, 0)))
        args.append(bias)

    if lane_dense:
        out_shape = jax.ShapeDtypeStruct((B, M * N), out_dtype)
        out_specs = pl.BlockSpec((bt, M * N), lambda b: (b, 0))
        kernel = _packed_dense_bias if bias is not None else _packed_dense_nobias
    else:
        out_shape = jax.ShapeDtypeStruct((B, M, N), out_dtype)
        out_specs = pl.BlockSpec((bt, M, N), lambda b: (b, 0, 0))
        kernel = _packed_bias if bias is not None else _packed_nobias

    return pl.pallas_call(
        kernel,
        out_shape=out_shape,
        grid_spec=pltpu.PrefetchScalarGridSpec(
            num_scalar_prefetch=0, grid=grid,
            in_specs=in_specs, out_specs=out_specs, scratch_shapes=[]),
        compiler_params=pltpu.CompilerParams(
            dimension_semantics=("parallel",), vmem_limit_bytes=vmem_limit),
        cost_estimate=cost,
    )(*args)


def _tiled_call(x, weight, bias, out_dtype, tm, tn, tk, deep_buffer,
                vmem_limit, cost):
    B, M, K = x.shape
    N = weight.shape[2]
    nk = K // tk
    args = [x, weight]

    if nk == 1:
        # Single reduction step: no accumulator scratch, no init/finalize.
        grid = (B, M // tm, N // tn)
        in_specs = [pl.BlockSpec((None, tm, K), lambda b, i, j: (b, i, 0)),
                    pl.BlockSpec((None, K, tn), lambda b, i, j: (b, 0, j))]
        if bias is not None:
            in_specs.append(pl.BlockSpec((None, 1, tn), lambda b, i, j: (b, 0, j)))
            args.append(bias)
            kernel = _fullk_bias
        else:
            kernel = _fullk_nobias
        out_specs = pl.BlockSpec((None, tm, tn), lambda b, i, j: (b, i, j))
        scratch = []
        dim_sem = ("parallel", "parallel", "parallel")
    else:
        grid = (B, M // tm, N // tn, nk)   # reduction axis last, "arbitrary"
        w_map = lambda b, i, j, k: (b, k, j)
        if deep_buffer:
            # depth-3 buffering on the weight stream: small-tm per-step compute is
            # too short for the default depth-2 pipeline to hide the W DMA.
            w_spec = pl.BlockSpec((None, tk, tn), w_map, pipeline_mode=pl.Buffered(3))
        else:
            w_spec = pl.BlockSpec((None, tk, tn), w_map)
        in_specs = [pl.BlockSpec((None, tm, tk), lambda b, i, j, k: (b, i, k)),
                    w_spec]
        if bias is not None:
            in_specs.append(pl.BlockSpec((None, 1, tn), lambda b, i, j, k: (b, 0, j)))
            args.append(bias)
            kernel = _ktiled_bias
        else:
            kernel = _ktiled_nobias
        out_specs = pl.BlockSpec((None, tm, tn), lambda b, i, j, k: (b, i, j))
        scratch = [pltpu.VMEM((tm, tn), jnp.float32)]
        dim_sem = ("parallel", "parallel", "parallel", "arbitrary")

    return pl.pallas_call(
        kernel,
        out_shape=jax.ShapeDtypeStruct((B, M, N), out_dtype),
        grid_spec=pltpu.PrefetchScalarGridSpec(
            num_scalar_prefetch=0, grid=grid,
            in_specs=in_specs, out_specs=out_specs, scratch_shapes=scratch),
        compiler_params=pltpu.CompilerParams(
            dimension_semantics=dim_sem, vmem_limit_bytes=vmem_limit),
        cost_estimate=cost,
    )(*args)


# ---------------------------------------------------------------------------
# Wrapper
# ---------------------------------------------------------------------------

def block_linear(x, weight, bias=None, *, compute_dtype=None,
                 tile_m=None, tile_n=None, tile_k=None):
    """x: (B, M, K), weight: (B, K, N), bias: (B, 1, N) or None -> (B, M, N)."""
    B, M, K = x.shape
    Bw, Kw, N = weight.shape
    assert Bw == B and Kw == K, "shape mismatch between x and weight"
    out_dtype = x.dtype

    if compute_dtype is not None:
        # NOTE: prefer storing the parameters directly in compute_dtype
        # (BlockLinear(param_dtype=...)) so this per-call cast is a no-op; a
        # wrapper-side cast re-streams the weights through HBM on every call.
        if x.dtype != compute_dtype:
            x = x.astype(compute_dtype)
        if weight.dtype != compute_dtype:
            weight = weight.astype(compute_dtype)
        if bias is not None and bias.dtype != compute_dtype:
            bias = bias.astype(compute_dtype)

    in_itemsize = jnp.dtype(x.dtype).itemsize
    out_itemsize = jnp.dtype(out_dtype).itemsize
    vmem_limit = _vmem_limit_bytes()
    data_budget = int(vmem_limit * 0.65)   # resident double-buffered tiles

    flops = 2 * B * M * K * N
    bytes_accessed = (B * M * K + B * K * N) * in_itemsize + B * M * N * out_itemsize
    if bias is not None:
        bytes_accessed += B * N * jnp.dtype(bias.dtype).itemsize
    cost = pl.CostEstimate(flops=flops, transcendentals=0,
                           bytes_accessed=bytes_accessed)

    # Real resident footprint of one packed block: double-buffered in/out tiles
    # plus the f32 einsum intermediate.
    per_block = 2 * (M * K + K * N + (N if bias is not None else 0)) * in_itemsize
    per_block += 2 * M * N * out_itemsize + M * N * 4

    small = (M <= 512 and N <= 512 and K <= 512 and per_block <= data_budget)

    if small:
        # -------- packed path --------
        bt_cap = max(1, min(B, data_budget // per_block))
        if B >= 2:
            # keep >= 2 grid steps so a 2-TensorCore chip (v7x) can split the
            # batch across cores; costs ~0.35us extra on 1-TC chips.
            bt_cap = max(1, min(bt_cap, B // 2))
        bt = bt_cap
        while B % bt:
            bt -= 1
        if bt < max(1, bt_cap // 2):
            # poor divisors (e.g. prime B): use a non-dividing bt with a cdiv
            # grid (partial last block masked) instead of degrading to bt=1.
            bt = bt_cap

        lane_dense = (N < 128) and ((M * N) % 128 == 0)
        if lane_dense:
            try:
                out = _packed_call(x, weight, bias, out_dtype, bt, True,
                                   vmem_limit, cost)
                return out.reshape(B, M, N)   # free: identical row-major layout
            except Exception:
                # TODO(synk): lane-dense (bt, M*N) store needs an in-kernel
                # reshape; fall back to the plain (bt, M, N) layout if this
                # Mosaic build rejects that reshape.
                pass
        return _packed_call(x, weight, bias, out_dtype, bt, False,
                            vmem_limit, cost)

    # -------- tiled path --------
    sub = _sublane_align(x.dtype)

    def footprint(tm_, tn_, tk_, nk_):
        f = 2 * (tm_ * tk_ + tk_ * tn_) * in_itemsize   # x/W tiles, double-buffered
        f += 2 * tm_ * tn_ * out_itemsize                # out tile, double-buffered
        if bias is not None:
            f += 2 * tn_ * in_itemsize
        if nk_ > 1:
            f += tm_ * tn_ * 4                           # f32 accumulator scratch
        return f

    if tile_m or tile_n or tile_k:
        tm = _pick_tile(M, tile_m or 512, sub)
        tn = _pick_tile(N, tile_n or 512, 128)
        if tile_k:
            tk = _pick_tile(K, tile_k, 128)
        else:
            tk = K if footprint(tm, tn, K, 1) <= data_budget else _pick_tile(K, 512, 128)
    else:
        tm = tn = tk = None
        for tm_t, tn_t in ((512, 512), (256, 512), (256, 256), (128, 256),
                           (128, 128), (64, 128), (32, 128), (16, 128), (8, 128)):
            tm_ = _pick_tile(M, tm_t, sub)
            tn_ = _pick_tile(N, tn_t, 128)
            # Prefer one reduction step (full K): no accumulator re-reads, no
            # init/finalize branches, fewest grid steps.
            if footprint(tm_, tn_, K, 1) <= data_budget:
                tm, tn, tk = tm_, tn_, K
                break
            rem = data_budget - footprint(tm_, tn_, 0, 2)
            tk_cap = rem // max(1, 2 * (tm_ + tn_) * in_itemsize)
            if tk_cap >= 128:
                tk_ = _pick_tile(K, int(tk_cap), 128)
                if footprint(tm_, tn_, tk_, 2) <= data_budget:
                    tm, tn, tk = tm_, tn_, tk_
                    break
        if tm is None:   # best-effort fallback for extreme shapes
            tm = _pick_tile(M, 128, sub)
            tn = _pick_tile(N, 128, 128)
            tk = _pick_tile(K, 512, 128)

    nk = K // tk
    deep_buffer = (nk >= 4 and tm <= 64)
    if deep_buffer:
        try:
            return _tiled_call(x, weight, bias, out_dtype, tm, tn, tk, True,
                               vmem_limit, cost)
        except Exception:
            pass  # fall back to the default depth-2 pipeline
    return _tiled_call(x, weight, bias, out_dtype, tm, tn, tk, False,
                       vmem_limit, cost)


class BlockLinear:
    """JAX/Pallas equivalent of the PyTorch BlockLinear module (forward pass)."""

    def __init__(self, num_blocks, input_block_dim, output_block_dim, bias=True,
                 *, key, param_dtype=jnp.float32):
        # PyTorch: weight ~ randn(num_blocks, in, out); bias = zeros(num_blocks, 1, out)
        self.weight = jax.random.normal(
            key, (num_blocks, input_block_dim, output_block_dim),
            dtype=jnp.float32).astype(param_dtype)
        self.bias = (jnp.zeros((num_blocks, 1, output_block_dim), dtype=param_dtype)
                     if bias else None)

    def __call__(self, x, *, compute_dtype=None):
        return block_linear(x, self.weight, self.bias, compute_dtype=compute_dtype)


if __name__ == "__main__":
    key = jax.random.PRNGKey(0)
    k_w, k_x, k_w2, k_b2, k_x2 = jax.random.split(key, 5)

    # ---- Case 1: small-block regime (packed path, lane-dense output) ----
    num_blocks, seq, in_dim, out_dim = 4, 8, 32, 32
    mod = BlockLinear(num_blocks, in_dim, out_dim, bias=True, key=k_w)
    x = jax.random.normal(k_x, (num_blocks, seq, in_dim), dtype=jnp.float32)

    out = jax.block_until_ready(mod(x))
    ref = jnp.einsum("bmk,bkn->bmn", x, mod.weight) + mod.bias
    assert out.shape == (num_blocks, seq, out_dim)
    assert jnp.allclose(out, ref, atol=1e-5, rtol=1e-5)

    # ---- Case 2: bias=False path (no zero-bias stream) ----
    mod_nb = BlockLinear(num_blocks, in_dim, out_dim, bias=False, key=k_w)
    out_nb = jax.block_until_ready(mod_nb(x))
    ref_nb = jnp.einsum("bmk,bkn->bmn", x, mod_nb.weight)
    assert jnp.allclose(out_nb, ref_nb, atol=1e-5, rtol=1e-5)

    # ---- Case 3: larger-K shape -> tiled path with a single full-K step ----
    B2, M2, K2, N2 = 2, 16, 640, 256
    w2 = jax.random.normal(k_w2, (B2, K2, N2), dtype=jnp.float32)
    b2 = 0.1 * jax.random.normal(k_b2, (B2, 1, N2), dtype=jnp.float32)
    x2 = jax.random.normal(k_x2, (B2, M2, K2), dtype=jnp.float32)
    out2 = jax.block_until_ready(block_linear(x2, w2, b2))
    ref2 = jnp.einsum("bmk,bkn->bmn", x2, w2) + b2
    assert jnp.allclose(out2, ref2, atol=1e-4, rtol=1e-4)

    # ---- Case 4: forced K tiling -> accumulator kernel (+ deep-buffered W) ----
    out3 = jax.block_until_ready(block_linear(x2, w2, b2, tile_k=128))
    assert jnp.allclose(out3, ref2, atol=1e-4, rtol=1e-4)

    # ---- Case 5: bf16 compute path (f32 MXU accumulation, f32 output) ----
    out_bf = jax.block_until_ready(mod(x, compute_dtype=jnp.bfloat16))
    ref_bf = (jnp.einsum("bmk,bkn->bmn",
                         x.astype(jnp.bfloat16).astype(jnp.float32),
                         mod.weight.astype(jnp.bfloat16).astype(jnp.float32))
              + mod.bias)
    assert out_bf.dtype == x.dtype
    assert jnp.allclose(out_bf, ref_bf, atol=2e-2, rtol=2e-2)

    print("KERNEL_OK")
</pallas_src>

<mosaic_0001>
module attributes {stable_mosaic.version = 11 : i64} {
  func.func @_packed_bias(%arg0: i32, %arg1: memref<2x8x32xf32, #tpu.memory_space<vmem>>, %arg2: memref<2x32x32xf32, #tpu.memory_space<vmem>>, %arg3: memref<2x1x32xf32, #tpu.memory_space<vmem>>, %arg4: memref<2x8x32xf32, #tpu.memory_space<vmem>>) attributes {dimension_semantics = [#tpu.dimension_semantics<parallel>], iteration_bounds = array<i64: 2>, scalar_prefetch = 0 : i64, scratch_operands = 0 : i64, tpu.core_type = #tpu.core_type<tc>, window_params = [{transform_indices = @transform_0, window_bounds = array<i64: 2, 8, 32>}, {transform_indices = @transform_1, window_bounds = array<i64: 2, 32, 32>}, {transform_indices = @transform_2, window_bounds = array<i64: 2, 1, 32>}, {transform_indices = @transform_3, window_bounds = array<i64: 2, 8, 32>}]} {
    %c0 = arith.constant 0 : index
    %c0_0 = arith.constant 0 : index
    %c0_1 = arith.constant 0 : index
    %0 = vector.load %arg1[%c0, %c0_0, %c0_1] : memref<2x8x32xf32, #tpu.memory_space<vmem>>, vector<2x8x32xf32>
    %c0_2 = arith.constant 0 : index
    %c0_3 = arith.constant 0 : index
    %c0_4 = arith.constant 0 : index
    %1 = vector.load %arg2[%c0_2, %c0_3, %c0_4] : memref<2x32x32xf32, #tpu.memory_space<vmem>>, vector<2x32x32xf32>
    "tpu.trace_start"() <{level = 10 : i32, message = "bmk,bkn->bmn"}> : () -> ()
    %cst = arith.constant dense<0.000000e+00> : vector<2x8x32xf32>
    %2 = tpu.matmul %0, %1, %cst {dimension_numbers = #tpu.dot_dimension_numbers<[2], [1], [1], [2], [0, 0, 0, 1, 1, 2], [0], [0]>} : vector<2x8x32xf32>, vector<2x32x32xf32>, vector<2x8x32xf32> -> vector<2x8x32xf32>
    "tpu.trace_stop"() : () -> ()
    %c0_5 = arith.constant 0 : index
    %c0_6 = arith.constant 0 : index
    %c0_7 = arith.constant 0 : index
    %3 = vector.load %arg3[%c0_5, %c0_6, %c0_7] : memref<2x1x32xf32, #tpu.memory_space<vmem>>, vector<2x1x32xf32>
    %4 = vector.broadcast %3 : vector<2x1x32xf32> to vector<2x8x32xf32>
    %5 = arith.addf %2, %4 : vector<2x8x32xf32>
    %c0_8 = arith.constant 0 : index
    %c0_9 = arith.constant 0 : index
    %c0_10 = arith.constant 0 : index
    %6 = vector.load %arg4[%c0_8, %c0_9, %c0_10] : memref<2x8x32xf32, #tpu.memory_space<vmem>>, vector<2x8x32xf32>
    tpu.vector_store %arg4[%c0_8, %c0_9, %c0_10], %5 {strides = array<i32>} : memref<2x8x32xf32, #tpu.memory_space<vmem>>, vector<2x8x32xf32>,
    return
  }
  func.func @transform_0(%arg0: i32) -> (i32, i32, i32) {
    %c0_i32 = arith.constant 0 : i32
    %c0_i32_0 = arith.constant 0 : i32
    %c0_i32_1 = arith.constant 0 : i32
    return %arg0, %c0_i32, %c0_i32_0 : i32, i32, i32
  }
  func.func @transform_1(%arg0: i32) -> (i32, i32, i32) {
    %c0_i32 = arith.constant 0 : i32
    %c0_i32_0 = arith.constant 0 : i32
    %c0_i32_1 = arith.constant 0 : i32
    return %arg0, %c0_i32, %c0_i32_0 : i32, i32, i32
  }
  func.func @transform_2(%arg0: i32) -> (i32, i32, i32) {
    %c0_i32 = arith.constant 0 : i32
    %c0_i32_0 = arith.constant 0 : i32
    %c0_i32_1 = arith.constant 0 : i32
    return %arg0, %c0_i32, %c0_i32_0 : i32, i32, i32
  }
  func.func @transform_3(%arg0: i32) -> (i32, i32, i32) {
    %c0_i32 = arith.constant 0 : i32
    %c0_i32_0 = arith.constant 0 : i32
    %c0_i32_1 = arith.constant 0 : i32
    return %arg0, %c0_i32, %c0_i32_0 : i32, i32, i32
  }
}

</mosaic_0001>

<bundles_post_ra>
// kernel: tpu_custom_call.1
= control target key start
LH: loop header
LB: loop body
LE: loop exit
PB: predicated region body
PF: predicated region fallthrough
CT: control target
= control target key end

     0   :  { %s945_s0 = inlined_call_operand.hbm [shape: f32[4,8,32], index: 0, kind: input, shape index: {}]   ;;  %s946_s1 = inlined_call_operand.hbm [shape: f32[4,32,32], index: 1, kind: input, shape index: {}]   ;;  %s947_s2 = inlined_call_operand.hbm [shape: f32[4,1,32], index: 2, kind: input, shape index: {}]   ;;  %s948_s3 = inlined_call_operand.hbm [shape: f32[4,8,32], index: 3, kind: output, shape index: {}]  }
   0x1   :  { %951 = sst [smem:[#allocation13_spill]] %s946_s1 }
   0x2   :  { %8 = vsyncpa [#allocation3], 0 }
   0x3   :  { %10 = vsyncpa [#allocation3 + $0x1], 0 }
   0x4   :  { %11 = vsyncpa [#allocation6], 0 }
   0x5   :  { %13 = vsyncpa [#allocation6 + $0x1], 0 }
   0x6   :  { %14 = vsyncpa [#allocation4], 0 }
   0x7   :  { %16 = vsyncpa [#allocation4 + $0x1], 0  ;;  %s755_s12 = smov 0   ;;  %s757_s13 = smov 0  }
   0x8   :  { %s759_s14 = smov 0   ;;  %s761_s15 = smov 0  }
   0x9 LB: > { %s776_s16 = sadd.s32 4294967295, %s727_s15   ;;  %s475_s17 = sadd.s32 4294967294, %s727_s15   ;;  %s727_s15 = sphi %s761_s15, %s965_s15   ;;  %s723_s14 = sphi %s759_s14, %s964_s14   ;;  %s719_s13 = sphi %s757_s13, %s963_s13   ;;  %s715_s12 = sphi %s755_s12, %s962_s12  }
   0xa   : > { %s780_s18 = sadd.s32 1, %s727_s15   ;;  %s29_s19 = sadd.s32 1, %s723_s14 }
   0xb   : > { %s26_s20 = ssub.s32 %s727_s15, %s780_s18  ;;  %p36_p0 = scmp.ne.s32.totalorder %s723_s14, %s719_s13 }
   0xc   : > { %p27_p1 = scmp.eq.s32.totalorder %s26_s20, 0  ;;  %p37_p2 = scmp.eq.s32.totalorder %s727_s15, 0 }
   0xd   : > { %p42_p3 = scmp.ne.s32.totalorder %s719_s13, %s715_s12  ;;  %p43_p4 = scmp.eq.s32.totalorder %s776_s16, 0 }
   0xe   : > { %s792_s21 = scalar_select %p27_p1, %s723_s14, %s29_s19  }
   0xf   : > { %p38_p5 = por %p37_p2, %p36_p0  ;;  %p794_p6 = por %p43_p4, %p42_p3 }
  0x10   : > { %952 = sst [smem:[#allocation12_spill]] %s792_s21  ;;  %p118_p7 = scmp.eq.s32.totalorder %s776_s16, 1 }
  0x11   : > { %p124_p8 = scmp.eq.s32.totalorder %s475_s17, 1  ;;  %p477_p9 = scmp.ge.s32.totalorder %s727_s15, 2 }
  0x12   : > { %p525_p10 = scmp.lt.s32.totalorder %s727_s15, 2  ;;  %p801_p11 = por %p118_p7, %p36_p0 }
  0x13   : > { %p805_p12 = por %p124_p8, %p42_p3  ;;  %s810_s25 = sand.u32 1, %s723_s14  }
  0x14   : > { %p812_p13 = pnand %p525_p10, %p38_p5  ;;  %s166_s27 = sand.u32 1, %s727_s15  }
  0x15   : > { %s481_s28 = sshll.u32 %s810_s25, 6  ;;  %s501_s29 = sshll.u32 %s727_s15, 6 }
  0x16   : > { %s957_s1 = sld [smem:[#allocation13_spill]]  ;;  %s170_s6 = scalar_lea.vmem [#allocation5], %s481_s28 }
  0x17   : > { %s179_s7 = sshll.u32 %s170_s6, 4  ;;  %p487_p0 = scmp.ge.s32.totalorder %s727_s15, 1  ;;  %s180_s7 = int_to_ptr.vmem [resolvable:$true] %s179_s7 }
  0x18   : > { %s823_s9 = scalar_lea.sflag [#allocation6], %s166_s27  ;;  %p571_p2 = pneg %p812_p13 }
  0x1c   : > { %s176_s5 = scalar_lea.hbm %s957_s1, %s501_s29  ;;  %s574_s20 = scalar_lea.hbm %s957_s1, 128 }
  0x1d   : > { %s177_s8 = sshll.u32 %s176_s5, 4  ;;  %s178_s8 = int_to_ptr.hbm [resolvable:$true] %s177_s8 }
  0x1e   : > { %s567_s10 = sshra.s32 %s178_s8, 4  ;;  %s568_s10 = int_to_ptr.hbm [resolvable:$true] %s567_s10 }
  0x1f   : > { %s569_s11 = scalar_lea.hbm %s568_s10, 64  ;;  %p575_p5 = scmp.lt.s32.totalorder %s568_s10, %s957_s1 }
  0x20   : > { %p570_p1 = scmp.ne.s32.totalorder %s568_s10, %s569_s11  ;;  %p576_p7 = scmp.lt.s32.totalorder %s574_s20, %s569_s11 }
  0x22   : > { %p572_p3 = pnand %p571_p2, %p570_p1  ;;  %p577_p8 = por %p576_p7, %p575_p5 }
  0x24   : > { %p573_p4 = pneg %p572_p3 }
  0x26   : > { %p578_p10 = pnand %p577_p8, %p573_p4 }
  0x28   : > { %581 = shalt.err (!%p578_p10)
}
  0x29   : > { %s949_s27 = smov 128   ;;  %s950_s30 = smov 8  }
  0x2a   : > { %517 = dma.hbm_to_vmem [thread:$0]  (!%p812_p13), %s178_s8, 1024, %s180_s7, %s823_s9, %s949_s27, %s949_s27, %s950_s30  }
  0x2b   : > { %p208_p1 = scmp.lt.s32.totalorder %s727_s15, 3  ;;  %s478_s4 = sshll.u32 %s810_s25, 4 }
  0x2c   : > { %s499_s5 = sshll.u32 %s727_s15, 4  ;;  %s148_s19 = scalar_lea.vmem [#allocation2], %s478_s4 }
  0x2d   : > { %p847_p3 = pnand %p487_p0, %p208_p1  ;;  %s153_s17 = scalar_lea.hbm %s945_s0, %s499_s5 }
  0x2e   : > { %s156_s20 = sshll.u32 %s148_s19, 4  ;;  %s154_s28 = sshll.u32 %s153_s17, 4  ;;  %s157_s20 = int_to_ptr.vmem [resolvable:$true] %s156_s20  ;;  %s155_s28 = int_to_ptr.hbm [resolvable:$true] %s154_s28 }
  0x2f   : > { %s485_s29 = sshll.u32 %s810_s25, 1  ;;  %s145_s7 = scalar_lea.sflag [#allocation3], %s810_s25 }
  0x30   : > { %s597_s8 = sshra.s32 %s155_s28, 4  ;;  %s604_s10 = scalar_lea.hbm %s945_s0, 32  ;;  %s598_s8 = int_to_ptr.hbm [resolvable:$true] %s597_s8 }
  0x31   : > { %s599_s27 = scalar_lea.hbm %s598_s8, 16  ;;  %p605_p7 = scmp.lt.s32.totalorder %s598_s8, %s945_s0 }
  0x32   : > { %p600_p4 = scmp.ne.s32.totalorder %s598_s8, %s599_s27  ;;  %p606_p8 = scmp.lt.s32.totalorder %s604_s10, %s599_s27 }
  0x34   : > { %p602_p0 = pnand %p600_p4, %p571_p2  ;;  %p607_p10 = por %p606_p8, %p605_p7 }
  0x36   : > { %p603_p5 = pneg %p602_p0 }
  0x38   : > { %p608_p1 = pnand %p607_p10, %p603_p5 }
  0x3a   : > { %611 = shalt.err (!%p608_p1)
}
  0x3b   : > { %s959_s25 = smov 8   ;;  %s960_s11 = smov 128  }
  0x3c   : > { %514 = dma.hbm_to_vmem [thread:$0]  (!%p812_p13), %s155_s28, 256, %s157_s20, %s145_s7, %s960_s11, %s960_s11, %s959_s25  }
  0x3d   : > { %s486_s17 = sshll.u32 %s727_s15, 1  ;;  %s193_s21 = scalar_lea.vmem [#allocation7], %s485_s29 }
  0x3e   : > { %s197_s30 = scalar_lea.hbm %s947_s2, %s486_s17  ;;  %s200_s5 = sshll.u32 %s193_s21, 4  ;;  %s201_s5 = int_to_ptr.vmem [resolvable:$true] %s200_s5 }
  0x3f   : > { %s198_s8 = sshll.u32 %s197_s30, 4  ;;  %s634_s28 = scalar_lea.hbm %s947_s2, 4  ;;  %s199_s8 = int_to_ptr.hbm [resolvable:$true] %s198_s8 }
  0x40   : > { %s627_s27 = sshra.s32 %s199_s8, 4  ;;  %s628_s27 = int_to_ptr.hbm [resolvable:$true] %s627_s27 }
  0x41   : > { %s629_s10 = scalar_lea.hbm %s628_s27, 2  ;;  %p635_p7 = scmp.lt.s32.totalorder %s628_s27, %s947_s2 }
  0x42   : > { %p630_p4 = scmp.ne.s32.totalorder %s628_s27, %s629_s10  ;;  %p636_p8 = scmp.lt.s32.totalorder %s634_s28, %s629_s10 }
  0x44   : > { %p632_p0 = pnand %p630_p4, %p571_p2  ;;  %p637_p10 = por %p636_p8, %p635_p7 }
  0x46   : > { %p633_p5 = pneg %p632_p0 }
  0x48   : > { %p638_p1 = pnand %p637_p10, %p633_p5 }
  0x4a   : > { %641 = shalt.err (!%p638_p1)
}
  0x4b   : > { %s731_s21 = smov 16   ;;  %s732_s29 = smov 1  }
  0x4c   : > { %520 = dma.hbm_to_vmem [thread:$0]  (!%p812_p13), %s199_s8, 32, %s201_s5, %s823_s9, %s731_s21, %s731_s21, %s732_s29  }
  0x4d   : > { %212 = sbr.rel (%p847_p3) target bundleno = 227 (0xe3), region = 32  ;;  %s889_s11 = sand.u32 (!%p847_p3), 1, %s719_s13  }
  0x4e   : > { %s488_s17 = sshll.u32 (!%p847_p3), %s889_s11, 4  ;;  %s215_s19 = scalar_lea.sflag (!%p847_p3), [#allocation3], %s889_s11 }
  0x4f   : > { %s218_s1 = scalar_lea.vmem (!%p847_p3), [#allocation2], %s488_s17 }
  0x52   : > { %702 = dma.done.wait (%p794_p6), %s215_s19, 256  }
  0x53   : > { %704 = vsyncadd (%p794_p6), %s215_s19, 4294967040  ;;  %s224_s26 = sand.u32 1, %s776_s16   ;;  %s489_s9 = sshll.u32 %s889_s11, 6 }
  0x54   : > { %s225_s6 = scalar_lea.sflag [#allocation6], %s224_s26  ;;  %s228_s30 = scalar_lea.vmem [#allocation5], %s489_s9 }
  0x55   : > { %706 = dma.done.wait (%p794_p6), %s225_s6, 1056  }
  0x56   : > { %708 = vsyncadd (%p794_p6), %s225_s6, 4294966240  ;;  %s490_s5 = sshll.u32 %s889_s11, 1  ;;  %v281_v0 = vld [vmem:[%s228_s30 + $0x18] sm:$0xff]  ;;  %v280_v2 = vld [vmem:[%s228_s30 + $0x10] sm:$0xff]  ;;  %vm294_vm0 = vcmask 261120   ;;  %s502_s22 = sshll.u32 %s776_s16, 4 }
  0x57   : > { %v285_v1 = vld [vmem:[%s228_s30 + $0x38] sm:$0xff]  ;;  %310 = vmatpush.msra.mxu0 %v281_v0  ;;  %v284_v3 = vld [vmem:[%s228_s30 + $0x30] sm:$0xff]  ;;  %v279_v4 = vld [vmem:[%s228_s30 + $0x8] sm:$0xff]  ;;  %s238_s8 = scalar_lea.vmem [#allocation7], %s490_s5  ;;  %s355_s4 = scalar_lea.hbm %s948_s3, %s502_s22 }
  0x58   : > { %333 = vmatpush.msra.mxu1 %v285_v1  ;;  %v283_v5 = vld [vmem:[%s228_s30 + $0x28] sm:$0xff]  ;;  %v278_v6 = vld [vmem:[%s228_s30] sm:$0xff]  ;;  %s271_s20 = scalar_lea.vmem [#allocation8], %s488_s17  ;;  %s358_s7 = sshll.u32 %s355_s4, 4  ;;  %s359_s7 = int_to_ptr.hbm [resolvable:$true] %s358_s7 }
  0x59   : > { %311 = vmatpush.msra.mxu0 %v280_v2  ;;  %v282_v7 = vld [vmem:[%s228_s30 + $0x20] sm:$0xff]  ;;  %v277_v9 = vld [vmem:[%s218_s1 + $0x8] sm:$0xff]  ;;  %s356_s28 = sshll.u32 %s271_s20, 4  ;;  %s344_s16 = scalar_lea.sflag [#allocation4], %s889_s11  ;;  %s357_s28 = int_to_ptr.vmem [resolvable:$true] %s356_s28 }
  0x5a   : > { %334 = vmatpush.msra.mxu1 %v284_v3  ;;  %v276_v8 = vld [vmem:[%s218_s1] sm:$0xff]  ;;  %s671_s25 = sshra.s32 %s359_s7, 4  ;;  %s677_s19 = scalar_lea.hbm %s948_s3, 32  ;;  %s672_s25 = int_to_ptr.hbm [resolvable:$true] %s671_s25 }
  0x5b   : > { %312 = vmatpush.msra.mxu0 %v279_v4  ;;  %v565_v10 = vld [vmem:[%s238_s8] ss:$0 sm:$0xff]  ;;  %v566_v11 = vld [vmem:[%s238_s8 + $0x1] ss:$0 sm:$0xff]  ;;  %s673_s21 = scalar_lea.hbm %s672_s25, 16  ;;  %p678_p3 = scmp.lt.s32.totalorder %s672_s25, %s948_s3 }
  0x5c   : > { %335 = vmatpush.msra.mxu1 %v283_v5  ;;  %p674_p6 = scmp.ne.s32.totalorder %s672_s25, %s673_s21  ;;  %p679_p4 = scmp.lt.s32.totalorder %s677_s19, %s673_s21 }
  0x5d   : > { %313 = vmatpush.msra.mxu0 %v278_v6 }
  0x5e   : > { %336 = vmatpush.msra.mxu1 %v282_v7  ;;  %492 = vmatmul.msk.f32.vlgmr.msra.gmra.mxu0 %vm294_vm0, %v276_v8  ;;  %p675_p13 = pnand %p674_p6, %p801_p11  ;;  %p680_p0 = por %p679_p4, %p678_p3 }
  0x5f   : > { %493 = vmatmul.msk.f32.vlgmr.msra.gmra.mxu1 %vm294_vm0, %v277_v9 }
  0x60   : > { %p676_p2 = pneg %p675_p13 }
  0x62   : > { %p681_p5 = pnand %p680_p0, %p676_p2 }
  0xdb   : > { %v315_v12 = vpop.f32.mrf.mxu0 }
  0xdc   : > { %v338_v13 = vpop.f32.mrf.mxu1  ;;  %v316_v14 = vadd.f32 %v565_v10, %v315_v12 }
  0xdd   : > { %v339_v15 = vadd.f32 %v566_v11, %v338_v13 }
  0xde   : > { %341 = vst.msk [vmem:[%s271_s20] sm:$0xff] %vm294_vm0, %v316_v14 }
  0xdf   : > { %342 = vst.msk [vmem:[%s271_s20 + $0x8] sm:$0xff] %vm294_vm0, %v339_v15 }
  0xe0   : > { %684 = shalt.err (!%p681_p5)
}
  0xe1   : > { %s733_s11 = smov 128   ;;  %s734_s9 = smov 8  }
  0xe2   : > { %509 = dma.vmem_to_hbm [thread:$0]  (%p801_p11), %s357_s28, 256, %s359_s7, %s344_s16, %s733_s11, %s733_s11, %s734_s9  }
  0xe3 PF: > { %s373_s6 = sand.u32 1, %s715_s12   ;;  %p522_p7 = pnand %p477_p9, %p805_p12 }
  0xe4   : > { %s374_s30 = scalar_lea.sflag [#allocation4], %s373_s6 }
  0xe5   : > { %p523_p8 = pneg %p522_p7 }
  0xe7   : > { %710 = dma.done.wait (%p523_p8), %s374_s30, 256  }
  0xe8   : > { %712 = vsyncadd (%p523_p8), %s374_s30, 4294967040  ;;  %s961_s5 = sld [smem:[#allocation12_spill]]  ;;  %p19_p10 = scmp.ge.s32.totalorder %s780_s18, 4  }
  0xe9   : > { %s962_s12 = smov %s719_s13  ;;  %s963_s13 = smov %s723_s14 }
  0xea   : > { %s965_s15 = smov %s780_s18  ;;  %21 = sbr.rel (!%p19_p10) target bundleno = 9 (0x9), region = 101 }
  0xee   : > { %s964_s14 = smov %s961_s5 }
  0xef   :  { %380 = vsyncpa [#allocation3], 1 }
  0xf0   :  { %382 = vsyncpa [#allocation3 + $0x1], 1 }
  0xf1   :  { %383 = vsyncpa [#allocation6], 1 }
  0xf2   :  { %385 = vsyncpa [#allocation6 + $0x1], 1 }
  0xf3   :  { %386 = vsyncpa [#allocation4], 1 }
  0xf4   :  { %388 = vsyncpa [#allocation4 + $0x1], 1 }

</bundles_post_ra>
